<compile_context>
chip_gen: v5e
topology: v5e:2x2
jax: 0.10.0
libtpu: 0.0.40
codegen_flags: <defaults>
</compile_context>

<pallas_src>
import jax
import jax.numpy as jnp
from jax.experimental import pallas as pl
from jax.experimental.pallas import tpu as pltpu

C_IN = 2
C_OUT = 2
LANE = 128


def conv_relu_kernel(params_ref, x_ref, o_ref):
    # params_ref (SMEM, f32[12], scalar-prefetched):
    #   [w1_00, w1_01, w1_10, w1_11, b1_0, b1_1,
    #    w2_00, w2_01, w2_10, w2_11, b2_0, b2_1]
    # x_ref / o_ref: (N, 2, TILE_R, 128) VMEM blocks (sublane/lane dense).
    x0 = x_ref[:, 0, :, :]          # (N, TILE_R, 128)
    x1 = x_ref[:, 1, :, :]

    # layer 1: 1x1 conv (channel mix) + ReLU -- VPU broadcast FMAs, no MXU.
    h0 = jnp.maximum(x0 * params_ref[0] + x1 * params_ref[1] + params_ref[4], 0.0)
    h1 = jnp.maximum(x0 * params_ref[2] + x1 * params_ref[3] + params_ref[5], 0.0)

    # layer 2: 1x1 conv + ReLU.
    y0 = jnp.maximum(h0 * params_ref[6] + h1 * params_ref[7] + params_ref[10], 0.0)
    y1 = jnp.maximum(h0 * params_ref[8] + h1 * params_ref[9] + params_ref[11], 0.0)

    o_ref[:, 0, :, :] = y0.astype(o_ref.dtype)
    o_ref[:, 1, :, :] = y1.astype(o_ref.dtype)


def _choose_tile_r(num_rows, n_batch):
    """Rows of 128 pixels per block.

    Block is (N, C, TILE_R, 128); one f32 block costs N*C*TILE_R*128*4 bytes.
    Keep a single block <= 2 MiB so (in + out) double-buffered stays <= 8 MiB,
    well under every generation's scoped-VMEM default.  TILE_R is either the
    full row count (single / ragged-free block) or a multiple of 8 (full
    sublane density)."""
    bytes_per_row = n_batch * C_IN * LANE * 4          # one operand, f32
    max_block_bytes = 2 * 1024 * 1024
    cap = max(8, (max_block_bytes // max(bytes_per_row, 1)) // 8 * 8)

    if num_rows < 16:
        # tiny problem: one block equal to the full array dims (always legal).
        return num_rows

    # keep at least 2 blocks so both v7x TensorCores get work; the extra grid
    # step is ~0.35us on single-TC v5e/v6e (negligible for a streaming kernel).
    cap = min(cap, max(8, ((num_rows + 1) // 2) // 8 * 8))

    # prefer an exact divisor of num_rows so the grid tiles the array evenly.
    for t in range(cap, 7, -8):
        if num_rows % t == 0:
            return t
    return cap   # ragged last block; Pallas masks it.


def net_conv2d_relu(x_nchw, w1, b1, w2, b2):
    """x_nchw: (N, 2, H, W) f32.  w*: (Cout, Cin, 1, 1), b*: (Cout,)."""
    N, C, H, W = x_nchw.shape
    assert C == C_IN
    P = H * W
    R = -(-P // LANE)                       # rows of 128 pixels (cdiv)

    if P % LANE == 0:
        # free, contiguous reshape: NCHW -> (N, C, P//128, 128)
        x = x_nchw.reshape(N, C, R, LANE)
        padded = False
    else:
        # rare path: minimal pad to a 128 multiple (one extra HBM pass).
        x = jnp.pad(x_nchw.reshape(N, C, P), ((0, 0), (0, 0), (0, R * LANE - P)))
        x = x.reshape(N, C, R, LANE)
        padded = True

    tile_r = _choose_tile_r(R, N)
    grid = (-(-R // tile_r),)

    # 12 scalars (weights + biases) scalar-prefetched into SMEM.
    params = jnp.concatenate(
        [w1.reshape(-1), b1.reshape(-1), w2.reshape(-1), b2.reshape(-1)]
    ).astype(jnp.float32)

    out = pl.pallas_call(
        conv_relu_kernel,
        out_shape=jax.ShapeDtypeStruct((N, C_OUT, R, LANE), x_nchw.dtype),
        grid_spec=pltpu.PrefetchScalarGridSpec(
            num_scalar_prefetch=1,
            grid=grid,
            in_specs=[
                pl.BlockSpec((N, C_IN, tile_r, LANE), lambda i, params: (0, 0, i, 0)),
            ],
            out_specs=pl.BlockSpec(
                (N, C_OUT, tile_r, LANE), lambda i, params: (0, 0, i, 0)
            ),
        ),
        compiler_params=pltpu.CompilerParams(
            dimension_semantics=("parallel",),
            vmem_limit_bytes=32 * 1024 * 1024,
        ),
    )(params, x)

    if padded:
        out = out.reshape(N, C_OUT, R * LANE)[:, :, :P]
    return out.reshape(N, C_OUT, H, W)


def _reference(x_nchw, w1, b1, w2, b2):
    # pure-JAX reference: 1x1 conv == per-pixel channel matmul, NCHW layout.
    w1m = w1.reshape(C_OUT, C_IN)
    w2m = w2.reshape(C_OUT, C_IN)
    h = jnp.maximum(
        jnp.einsum("oc,nchw->nohw", w1m, x_nchw) + b1[None, :, None, None], 0.0
    )
    y = jnp.maximum(
        jnp.einsum("oc,nchw->nohw", w2m, h) + b2[None, :, None, None], 0.0
    )
    return y


if __name__ == "__main__":
    key = jax.random.PRNGKey(0)
    k_x, k_w1, k_b1, k_w2, k_b2 = jax.random.split(key, 5)

    # shapes consistent with Conv2d(2, 2, 1): N=2, C=2, H=W=16
    x = jax.random.normal(k_x, (2, 2, 16, 16), dtype=jnp.float32)

    w1 = jax.random.normal(k_w1, (C_OUT, C_IN, 1, 1), dtype=jnp.float32) * 0.5
    b1 = jax.random.normal(k_b1, (C_OUT,), dtype=jnp.float32) * 0.1
    w2 = jax.random.normal(k_w2, (C_OUT, C_IN, 1, 1), dtype=jnp.float32) * 0.5
    b2 = jax.random.normal(k_b2, (C_OUT,), dtype=jnp.float32) * 0.1

    out = net_conv2d_relu(x, w1, b1, w2, b2)
    out = jax.block_until_ready(out)

    ref = _reference(x, w1, b1, w2, b2)
    assert out.shape == (2, 2, 16, 16)
    assert jnp.allclose(out, ref, atol=1e-5, rtol=1e-5)

    print("KERNEL_OK")
</pallas_src>

<mosaic_0001>
module attributes {stable_mosaic.version = 11 : i64} {
  func.func @conv_relu_kernel(%arg0: i32, %arg1: memref<12xf32, #tpu.memory_space<smem>>, %arg2: memref<2x2x2x128xf32, #tpu.memory_space<vmem>>, %arg3: memref<2x2x2x128xf32, #tpu.memory_space<vmem>>) attributes {dimension_semantics = [#tpu.dimension_semantics<parallel>], iteration_bounds = array<i64: 1>, scalar_prefetch = 1 : i64, scratch_operands = 0 : i64, tpu.core_type = #tpu.core_type<tc>, window_params = [{transform_indices = @transform_0, window_bounds = array<i64: 2, 2, 2, 128>}, {transform_indices = @transform_1, window_bounds = array<i64: 2, 2, 2, 128>}]} {
    %c0 = arith.constant 0 : index
    %c0_0 = arith.constant 0 : index
    %c0_1 = arith.constant 0 : index
    %c0_2 = arith.constant 0 : index
    %0 = vector.load %arg2[%c0, %c0_0, %c0_1, %c0_2] : memref<2x2x2x128xf32, #tpu.memory_space<vmem>>, vector<2x1x2x128xf32>
    %1 = vector.shape_cast %0 : vector<2x1x2x128xf32> to vector<2x2x128xf32>
    %c0_3 = arith.constant 0 : index
    %c1 = arith.constant 1 : index
    %c0_4 = arith.constant 0 : index
    %c0_5 = arith.constant 0 : index
    %2 = vector.load %arg2[%c0_3, %c1, %c0_4, %c0_5] : memref<2x2x2x128xf32, #tpu.memory_space<vmem>>, vector<2x1x2x128xf32>
    %3 = vector.shape_cast %2 : vector<2x1x2x128xf32> to vector<2x2x128xf32>
    %c0_6 = arith.constant 0 : index
    %4 = memref.load %arg1[%c0_6] : memref<12xf32, #tpu.memory_space<smem>>
    %5 = vector.broadcast %4 : f32 to vector<2x2x128xf32>
    %6 = arith.mulf %1, %5 : vector<2x2x128xf32>
    %c1_7 = arith.constant 1 : index
    %7 = memref.load %arg1[%c1_7] : memref<12xf32, #tpu.memory_space<smem>>
    %8 = vector.broadcast %7 : f32 to vector<2x2x128xf32>
    %9 = arith.mulf %3, %8 : vector<2x2x128xf32>
    %10 = arith.addf %6, %9 : vector<2x2x128xf32>
    %c4 = arith.constant 4 : index
    %11 = memref.load %arg1[%c4] : memref<12xf32, #tpu.memory_space<smem>>
    %12 = vector.broadcast %11 : f32 to vector<2x2x128xf32>
    %13 = arith.addf %10, %12 : vector<2x2x128xf32>
    %cst = arith.constant 0.000000e+00 : f32
    %14 = vector.broadcast %cst : f32 to vector<2x2x128xf32>
    %15 = arith.maximumf %13, %14 : vector<2x2x128xf32>
    %c2 = arith.constant 2 : index
    %16 = memref.load %arg1[%c2] : memref<12xf32, #tpu.memory_space<smem>>
    %17 = vector.broadcast %16 : f32 to vector<2x2x128xf32>
    %18 = arith.mulf %1, %17 : vector<2x2x128xf32>
    %c3 = arith.constant 3 : index
    %19 = memref.load %arg1[%c3] : memref<12xf32, #tpu.memory_space<smem>>
    %20 = vector.broadcast %19 : f32 to vector<2x2x128xf32>
    %21 = arith.mulf %3, %20 : vector<2x2x128xf32>
    %22 = arith.addf %18, %21 : vector<2x2x128xf32>
    %c5 = arith.constant 5 : index
    %23 = memref.load %arg1[%c5] : memref<12xf32, #tpu.memory_space<smem>>
    %24 = vector.broadcast %23 : f32 to vector<2x2x128xf32>
    %25 = arith.addf %22, %24 : vector<2x2x128xf32>
    %cst_8 = arith.constant 0.000000e+00 : f32
    %26 = vector.broadcast %cst_8 : f32 to vector<2x2x128xf32>
    %27 = arith.maximumf %25, %26 : vector<2x2x128xf32>
    %c6 = arith.constant 6 : index
    %28 = memref.load %arg1[%c6] : memref<12xf32, #tpu.memory_space<smem>>
    %29 = vector.broadcast %28 : f32 to vector<2x2x128xf32>
    %30 = arith.mulf %15, %29 : vector<2x2x128xf32>
    %c7 = arith.constant 7 : index
    %31 = memref.load %arg1[%c7] : memref<12xf32, #tpu.memory_space<smem>>
    %32 = vector.broadcast %31 : f32 to vector<2x2x128xf32>
    %33 = arith.mulf %27, %32 : vector<2x2x128xf32>
    %34 = arith.addf %30, %33 : vector<2x2x128xf32>
    %c10 = arith.constant 10 : index
    %35 = memref.load %arg1[%c10] : memref<12xf32, #tpu.memory_space<smem>>
    %36 = vector.broadcast %35 : f32 to vector<2x2x128xf32>
    %37 = arith.addf %34, %36 : vector<2x2x128xf32>
    %cst_9 = arith.constant 0.000000e+00 : f32
    %38 = vector.broadcast %cst_9 : f32 to vector<2x2x128xf32>
    %39 = arith.maximumf %37, %38 : vector<2x2x128xf32>
    %c8 = arith.constant 8 : index
    %40 = memref.load %arg1[%c8] : memref<12xf32, #tpu.memory_space<smem>>
    %41 = vector.broadcast %40 : f32 to vector<2x2x128xf32>
    %42 = arith.mulf %15, %41 : vector<2x2x128xf32>
    %c9 = arith.constant 9 : index
    %43 = memref.load %arg1[%c9] : memref<12xf32, #tpu.memory_space<smem>>
    %44 = vector.broadcast %43 : f32 to vector<2x2x128xf32>
    %45 = arith.mulf %27, %44 : vector<2x2x128xf32>
    %46 = arith.addf %42, %45 : vector<2x2x128xf32>
    %c11 = arith.constant 11 : index
    %47 = memref.load %arg1[%c11] : memref<12xf32, #tpu.memory_space<smem>>
    %48 = vector.broadcast %47 : f32 to vector<2x2x128xf32>
    %49 = arith.addf %46, %48 : vector<2x2x128xf32>
    %cst_10 = arith.constant 0.000000e+00 : f32
    %50 = vector.broadcast %cst_10 : f32 to vector<2x2x128xf32>
    %51 = arith.maximumf %49, %50 : vector<2x2x128xf32>
    %c0_11 = arith.constant 0 : index
    %c0_12 = arith.constant 0 : index
    %c0_13 = arith.constant 0 : index
    %c0_14 = arith.constant 0 : index
    %52 = vector.load %arg3[%c0_11, %c0_12, %c0_13, %c0_14] : memref<2x2x2x128xf32, #tpu.memory_space<vmem>>, vector<2x1x2x128xf32>
    %53 = vector.shape_cast %52 : vector<2x1x2x128xf32> to vector<2x2x128xf32>
    %54 = vector.shape_cast %39 : vector<2x2x128xf32> to vector<2x1x2x128xf32>
    tpu.vector_store %arg3[%c0_11, %c0_12, %c0_13, %c0_14], %54 {strides = array<i32>} : memref<2x2x2x128xf32, #tpu.memory_space<vmem>>, vector<2x1x2x128xf32>,
    %c0_15 = arith.constant 0 : index
    %c1_16 = arith.constant 1 : index
    %c0_17 = arith.constant 0 : index
    %c0_18 = arith.constant 0 : index
    %55 = vector.load %arg3[%c0_15, %c1_16, %c0_17, %c0_18] : memref<2x2x2x128xf32, #tpu.memory_space<vmem>>, vector<2x1x2x128xf32>
    %56 = vector.shape_cast %55 : vector<2x1x2x128xf32> to vector<2x2x128xf32>
    %57 = vector.shape_cast %51 : vector<2x2x128xf32> to vector<2x1x2x128xf32>
    tpu.vector_store %arg3[%c0_15, %c1_16, %c0_17, %c0_18], %57 {strides = array<i32>} : memref<2x2x2x128xf32, #tpu.memory_space<vmem>>, vector<2x1x2x128xf32>,
    return
  }
  func.func @transform_0(%arg0: i32, %arg1: memref<12xf32, #tpu.memory_space<smem>>) -> (i32, i32, i32, i32) {
    %c0_i32 = arith.constant 0 : i32
    %c0_i32_0 = arith.constant 0 : i32
    %c0_i32_1 = arith.constant 0 : i32
    %c0_i32_2 = arith.constant 0 : i32
    return %c0_i32, %c0_i32_0, %arg0, %c0_i32_1 : i32, i32, i32, i32
  }
  func.func @transform_1(%arg0: i32, %arg1: memref<12xf32, #tpu.memory_space<smem>>) -> (i32, i32, i32, i32) {
    %c0_i32 = arith.constant 0 : i32
    %c0_i32_0 = arith.constant 0 : i32
    %c0_i32_1 = arith.constant 0 : i32
    %c0_i32_2 = arith.constant 0 : i32
    return %c0_i32, %c0_i32_0, %arg0, %c0_i32_1 : i32, i32, i32, i32
  }
}

</mosaic_0001>

<bundles_post_ra>
// kernel: tpu_custom_call.1
= control target key start
LH: loop header
LB: loop body
LE: loop exit
PB: predicated region body
PF: predicated region fallthrough
CT: control target
= control target key end

     0   :  { %s209_s12 = smov [#allocation3]   ;;  %s259_s0 = inlined_call_operand.hbm [shape: f32[12], index: 0, kind: input, shape index: {}]   ;;  %s260_s1 = inlined_call_operand.hbm [shape: f32[2,2,2,128], index: 1, kind: input, shape index: {}]   ;;  %s261_s2 = inlined_call_operand.hbm [shape: f32[2,2,2,128], index: 2, kind: output, shape index: {}]  }
   0x1   :  { %s8_s11 = sshll.u32 %s259_s0, 4  ;;  %s9_s11 = int_to_ptr.hbm [resolvable:$true] %s8_s11 }
   0x2   :  { %11 = dma.hbm_to_smem %s9_s11, 16, %s209_s12, [#allocation2] }
   0x3   :  { %203 = dma.done.wait [#allocation2], 16 }
   0x4   :  { %204 = vsyncadd [#allocation2], 4294967280 }
   0x5   :  { %14 = sfence }
   0x6   :  { %15 = vsyncpa [#allocation5], 0 }
   0x7   :  { %16 = vsyncpa [#allocation6], 0  ;;  %s21_s15 = sshll.u32 %s260_s1, 4  ;;  %s210_s16 = smov [#allocation4]   ;;  %s22_s15 = int_to_ptr.hbm [resolvable:$true] %s21_s15 }
   0x8   :  { %s23_s17 = sshll.u32 %s210_s16, 4  ;;  %s211_s18 = smov 32   ;;  %s24_s17 = int_to_ptr.vmem [resolvable:$true] %s23_s17 }
   0x9   :  { %s212_s19 = smov 2  }
   0xa   :  { %29 = dma.hbm_to_vmem [thread:$0]  %s22_s15, 128, %s24_s17, [#allocation5], %s211_s18, %s211_s18, %s212_s19  }
   0xb   :  { %205 = dma.done.wait [#allocation5], 128  }
   0xc   :  { %206 = vsyncadd [#allocation5], 4294967168  ;;  %s39_s0 = sld [smem:[#allocation3]]  ;;  %v34_v0 = vld [vmem:[#allocation4] sm:$0x3]  ;;  %s213_s30 = smov [#allocation7]  }
   0xd   :  { %s127_s20 = sld [smem:[#allocation3 + $0x1]]  ;;  %v37_v1 = vld [vmem:[#allocation4 + $0x2] sm:$0x3]  ;;  %v35_v5 = vld [vmem:[#allocation4 + $0x4] sm:$0x3]  ;;  %s112_s3 = sshll.u32 %s213_s30, 4  ;;  %s113_s3 = int_to_ptr.vmem [resolvable:$true] %s112_s3 }
   0xe   :  { %s238_s21 = sld [smem:[#allocation3 + $0x4]]  ;;  %v38_v6 = vld [vmem:[#allocation4 + $0x6] sm:$0x3]  ;;  %s114_s6 = sshll.u32 %s261_s2, 4  ;;  %s115_s6 = int_to_ptr.hbm [resolvable:$true] %s114_s6 }
   0xf   :  { %s129_s22 = sld [smem:[#allocation3 + $0x2]] }
  0x10   :  { %s130_s23 = sld [smem:[#allocation3 + $0x3]] }
  0x11   :  { %s240_s1 = sld [smem:[#allocation3 + $0x5]] }
  0x12   :  { %v40_v2 = vstv %s39_s0  ;;  %s242_s24 = sld [smem:[#allocation3 + $0x6]] }
  0x13   :  { %v41_v3 = vmul.f32 %v40_v2, %v34_v0  ;;  %v44_v4 = vstv %s127_s20  ;;  %s244_s25 = sld [smem:[#allocation3 + $0x7]]  ;;  %v42_v8 = vmul.f32 %v40_v2, %v35_v5 }
  0x14   :  { %v45_v7 = vmul.f32 %v44_v4, %v37_v1  ;;  %v46_v9 = vmul.f32 %v44_v4, %v38_v6  ;;  %v50_v10 = vstv %s238_s21  ;;  %s135_s26 = sld [smem:[#allocation3 + $0x8]] }
  0x15   :  { %v56_v11 = vstv %s129_s22  ;;  %s136_s27 = sld [smem:[#allocation3 + $0x9]] }
  0x16   :  { %v47_v12 = vadd.f32 %v45_v7, %v41_v3  ;;  %v57_v13 = vmul.f32 %v56_v11, %v34_v0  ;;  %v60_v14 = vstv %s130_s23  ;;  %v48_v15 = vadd.f32 %v46_v9, %v42_v8  ;;  %s247_s28 = sld [smem:[#allocation3 + $0xa]] }
  0x17   :  { %v61_v16 = vmul.f32 %v60_v14, %v37_v1  ;;  %v58_v17 = vmul.f32 %v56_v11, %v35_v5  ;;  %v62_v18 = vmul.f32 %v60_v14, %v38_v6  ;;  %v66_v20 = vstv %s240_s1  ;;  %s137_s29 = sld [smem:[#allocation3 + $0xb]] }
  0x18   :  { %v51_v19 = vadd.f32 %v50_v10, %v47_v12  ;;  %v52_v21 = vadd.f32 %v50_v10, %v48_v15  ;;  %v72_v23 = vstv %s242_s24 }
  0x19   :  { %v63_v22 = vadd.f32 %v61_v16, %v57_v13  ;;  %v64_v24 = vadd.f32 %v62_v18, %v58_v17  ;;  %v76_v31 = vstv %s244_s25 }
  0x1a   :  { %v53_v25 = vmax.f32 %v51_v19, 0.0  ;;  %v54_v26 = vmax.f32 %v52_v21, 0.0  ;;  %v88_v29 = vstv %s135_s26 }
  0x1b   :  { %v67_v27 = vadd.f32 %v66_v20, %v63_v22  ;;  %v68_v28 = vadd.f32 %v66_v20, %v64_v24  ;;  %v92_v33 = vstv %s136_s27 }
  0x1c   :  { %v73_v30 = vmul.f32 %v72_v23, %v53_v25  ;;  %v74_v32 = vmul.f32 %v72_v23, %v54_v26  ;;  %v89_v36 = vmul.f32 %v88_v29, %v53_v25  ;;  %v90_v37 = vmul.f32 %v88_v29, %v54_v26 }
  0x1d   :  { %v69_v34 = vmax.f32 %v67_v27, 0.0  ;;  %v70_v35 = vmax.f32 %v68_v28, 0.0  ;;  %v82_v42 = vstv %s247_s28  ;;  %v98_v43 = vstv %s137_s29 }
  0x1f   :  { %v77_v38 = vmul.f32 %v76_v31, %v69_v34  ;;  %v78_v39 = vmul.f32 %v76_v31, %v70_v35  ;;  %v93_v40 = vmul.f32 %v92_v33, %v69_v34  ;;  %v94_v41 = vmul.f32 %v92_v33, %v70_v35 }
  0x21   :  { %v79_v44 = vadd.f32 %v77_v38, %v73_v30  ;;  %v80_v45 = vadd.f32 %v78_v39, %v74_v32  ;;  %v95_v46 = vadd.f32 %v93_v40, %v89_v36  ;;  %v96_v47 = vadd.f32 %v94_v41, %v90_v37 }
  0x23   :  { %v83_v48 = vadd.f32 %v82_v42, %v79_v44  ;;  %v84_v49 = vadd.f32 %v82_v42, %v80_v45  ;;  %v99_v50 = vadd.f32 %v98_v43, %v95_v46  ;;  %v100_v51 = vadd.f32 %v98_v43, %v96_v47 }
  0x25   :  { %v85_v52 = vmax.f32 %v83_v48, 0.0  ;;  %v86_v53 = vmax.f32 %v84_v49, 0.0  ;;  %v101_v54 = vmax.f32 %v99_v50, 0.0  ;;  %v102_v55 = vmax.f32 %v100_v51, 0.0 }
  0x27   :  { %103 = vst [vmem:[#allocation7] sm:$0x3] %v85_v52 }
  0x28   :  { %104 = vst [vmem:[#allocation7 + $0x4] sm:$0x3] %v86_v53 }
  0x29   :  { %106 = vst [vmem:[#allocation7 + $0x2] sm:$0x3] %v101_v54 }
  0x2a   :  { %107 = vst [vmem:[#allocation7 + $0x6] sm:$0x3] %v102_v55 }
  0x2b   :  { %120 = dma.vmem_to_hbm [thread:$0]  %s113_s3, 128, %s115_s6, [#allocation6], %s211_s18, %s211_s18, %s212_s19  }
  0x2c   :  { %207 = dma.done.wait [#allocation6], 128  }
  0x2d   :  { %208 = vsyncadd [#allocation6], 4294967168 }
  0x2e   :  { %125 = vsyncpa [#allocation5], 1 }
  0x2f   :  { %126 = vsyncpa [#allocation6], 1 }

</bundles_post_ra>
